<compile_context>
chip_gen: v5e
topology: v5e:2x2
jax: 0.10.0
libtpu: 0.0.40
codegen_flags: <defaults>
</compile_context>

<pallas_src>
import functools

import jax
import jax.numpy as jnp
from jax.experimental import pallas as pl
from jax.experimental.pallas import tpu as pltpu


def _round_up(n, m):
    return ((n + m - 1) // m) * m


# ---------------------------------------------------------------------------
# Kernels
# ---------------------------------------------------------------------------
def _fused_linear_kernel(w_ref, b_ref, x_ref, o_ref):
    # w_ref: (D_in, D_out)  resident fused weight (bf16)
    # b_ref: (1,  D_out)    resident fused bias   (f32)
    # x_ref: (TB, D_in)     streamed batch tile, natural layout (bf16)
    # o_ref: (TB, D_out)    output tile (f32)
    y = jnp.dot(x_ref[...], w_ref[...], preferred_element_type=jnp.float32)
    o_ref[...] = (y + b_ref[...]).astype(o_ref.dtype)


def _two_layer_kernel(w1_ref, b1_ref, w2_ref, b2_ref, x_ref, o_ref):
    # Un-fused path for wide layers: the (TB, hidden) intermediate never leaves
    # the chip.  Accumulation and bias adds in f32, matmul operands bf16.
    h = jnp.dot(x_ref[...], w1_ref[...], preferred_element_type=jnp.float32)
    h = h + b1_ref[...]
    y = jnp.dot(h.astype(w2_ref.dtype), w2_ref[...],
                preferred_element_type=jnp.float32)
    o_ref[...] = (y + b2_ref[...]).astype(o_ref.dtype)


# ---------------------------------------------------------------------------
# Tile selection
# ---------------------------------------------------------------------------
def _pick_batch_tile(batch, d_in, hidden, d_out, stream_itemsize,
                     target_step_bytes=2 << 20, vmem_budget_bytes=12 << 20):
    """Pick the batch tile: >= ~2 MiB of x per grid step (amortize per-step
    overhead), capped so double-buffered tiles fit well inside every
    generation's scoped-VMEM default, and never larger than the batch."""
    row_stream_bytes = max(d_in * stream_itemsize, 1)
    tb = -(-target_step_bytes // row_stream_bytes)            # ceil div
    per_row_vmem = (2 * d_in * stream_itemsize                # x double-buffer
                    + 2 * d_out * 4                           # out double-buffer
                    + hidden * 4)                             # intermediate headroom
    tb = min(tb, max(vmem_budget_bytes // per_row_vmem, 8))
    tb = min(tb, _round_up(batch, 8))
    tb = max((tb // 8) * 8, 8)                                # (8, 128) sublane rule
    return tb


# ---------------------------------------------------------------------------
# Wrapper
# ---------------------------------------------------------------------------
@functools.partial(jax.jit, static_argnames=("block_b", "stream_dtype"))
def mlp_forward(x, w1, b1, w2, b2, *, block_b=None, stream_dtype=jnp.bfloat16):
    """Forward pass of Model: Linear(D_in, 32) -> Linear(32, D_out), no activation.

    x : (B, D_in) f32
    w1: (D_in, 32)  b1: (32,)      (PyTorch linear1 weight, transposed)
    w2: (32, D_out) b2: (D_out,)   (PyTorch linear2 weight, transposed)
    """
    batch, d_in = x.shape
    hidden = w1.shape[1]
    d_out = w2.shape[1]

    stream_dtype = jnp.dtype(stream_dtype)
    xs = x.astype(stream_dtype) if x.dtype != stream_dtype else x

    if block_b is None:
        tb = _pick_batch_tile(batch, d_in, hidden, d_out, stream_dtype.itemsize)
    else:
        tb = max((min(block_b, _round_up(batch, 8)) // 8) * 8, 8)

    grid = (pl.cdiv(batch, tb),)                # ragged last block handled by Pallas
    out_shape = jax.ShapeDtypeStruct((batch, d_out), jnp.float32)
    x_spec = pl.BlockSpec((tb, d_in), lambda i: (i, 0))       # streamed x tile
    o_spec = pl.BlockSpec((tb, d_out), lambda i: (i, 0))
    params = pltpu.CompilerParams(dimension_semantics=("parallel",))

    # Fuse the two linears only while the fused weight stays skinny; otherwise
    # fusion multiplies MXU FLOPs / weight bytes and would be a regression.
    fuse = (d_in * d_out) <= hidden * (d_in + d_out)

    if fuse:
        # Valid only because there is no nonlinearity/dropout between the layers.
        w = jnp.dot(w1, w2, preferred_element_type=jnp.float32)         # (D_in, D_out)
        b = jnp.dot(b1, w2, preferred_element_type=jnp.float32) + b2    # (D_out,)
        return pl.pallas_call(
            _fused_linear_kernel,
            out_shape=out_shape,
            grid=grid,
            in_specs=[
                pl.BlockSpec((d_in, d_out), lambda i: (0, 0)),   # resident fused weight
                pl.BlockSpec((1, d_out), lambda i: (0, 0)),      # resident fused bias
                x_spec,
            ],
            out_specs=o_spec,
            compiler_params=params,
        )(w.astype(stream_dtype), b.reshape(1, d_out), xs)

    return pl.pallas_call(
        _two_layer_kernel,
        out_shape=out_shape,
        grid=grid,
        in_specs=[
            pl.BlockSpec((d_in, hidden), lambda i: (0, 0)),      # resident w1
            pl.BlockSpec((1, hidden), lambda i: (0, 0)),         # resident b1
            pl.BlockSpec((hidden, d_out), lambda i: (0, 0)),     # resident w2
            pl.BlockSpec((1, d_out), lambda i: (0, 0)),          # resident b2
            x_spec,
        ],
        out_specs=o_spec,
        compiler_params=params,
    )(w1.astype(stream_dtype), b1.reshape(1, hidden),
      w2.astype(stream_dtype), b2.reshape(1, d_out), xs)


def init_linear_params(key, in_features, out_features):
    # PyTorch nn.Linear default init: U(-1/sqrt(fan_in), 1/sqrt(fan_in)).
    kw, kb = jax.random.split(key)
    bound = 1.0 / jnp.sqrt(jnp.float32(in_features))
    w = jax.random.uniform(kw, (in_features, out_features), jnp.float32, -bound, bound)
    b = jax.random.uniform(kb, (out_features,), jnp.float32, -bound, bound)
    return w, b


if __name__ == "__main__":
    key = jax.random.PRNGKey(0)
    kx, k1, k2, kx2, k3, k4 = jax.random.split(key, 6)

    # --- main shapes consistent with the diabetes-regression module: 8 -> 32 -> 1 ---
    batch, input_dim, hidden, output_dim = 8, 8, 32, 1
    x = jax.random.normal(kx, (batch, input_dim), jnp.float32)
    w1, b1 = init_linear_params(k1, input_dim, hidden)
    w2, b2 = init_linear_params(k2, hidden, output_dim)

    out = jax.block_until_ready(mlp_forward(x, w1, b1, w2, b2))
    assert out.shape == (batch, output_dim)

    # Pure-JAX f32 reference of the original (unfused) two-layer forward.
    ref = (x @ w1 + b1) @ w2 + b2
    # bf16-matched reference (same rounding of the streamed operands as the kernel).
    w_f = jnp.dot(w1, w2, preferred_element_type=jnp.float32)
    b_f = jnp.dot(b1, w2, preferred_element_type=jnp.float32) + b2
    ref_bf16 = (x.astype(jnp.bfloat16).astype(jnp.float32)
                @ w_f.astype(jnp.bfloat16).astype(jnp.float32) + b_f)
    assert jnp.allclose(out, ref_bf16, atol=5e-3, rtol=5e-3), \
        float(jnp.max(jnp.abs(out - ref_bf16)))
    assert jnp.allclose(out, ref, atol=3e-2, rtol=3e-2), \
        float(jnp.max(jnp.abs(out - ref)))

    # --- exercise the un-fused (wide-layer) path as well ---
    b2_, in2, out2 = 16, 128, 128
    x2 = jax.random.normal(kx2, (b2_, in2), jnp.float32)
    w1b, b1b = init_linear_params(k3, in2, hidden)
    w2b, b2b = init_linear_params(k4, hidden, out2)
    out_wide = jax.block_until_ready(mlp_forward(x2, w1b, b1b, w2b, b2b))
    ref_wide = (x2 @ w1b + b1b) @ w2b + b2b
    assert out_wide.shape == (b2_, out2)
    assert jnp.allclose(out_wide, ref_wide, atol=5e-2, rtol=5e-2), \
        float(jnp.max(jnp.abs(out_wide - ref_wide)))

    print("KERNEL_OK")
</pallas_src>

<mosaic_0001>
module attributes {stable_mosaic.version = 11 : i64} {
  func.func @_fused_linear_kernel(%arg0: i32, %arg1: memref<8x1xbf16, #tpu.memory_space<vmem>>, %arg2: memref<1x1xf32, #tpu.memory_space<vmem>>, %arg3: memref<8x8xbf16, #tpu.memory_space<vmem>>, %arg4: memref<8x1xf32, #tpu.memory_space<vmem>>) attributes {dimension_semantics = [#tpu.dimension_semantics<parallel>], iteration_bounds = array<i64: 1>, scalar_prefetch = 0 : i64, scratch_operands = 0 : i64, tpu.core_type = #tpu.core_type<tc>, window_params = [{pipeline_mode = #tpu.pipeline_mode<synchronous>, transform_indices = @transform_0, window_bounds = array<i64: 8, 1>}, {pipeline_mode = #tpu.pipeline_mode<synchronous>, transform_indices = @transform_1, window_bounds = array<i64: 1, 1>}, {transform_indices = @transform_2, window_bounds = array<i64: 8, 8>}, {transform_indices = @transform_3, window_bounds = array<i64: 8, 1>}]} {
    %c0 = arith.constant 0 : index
    %c0_0 = arith.constant 0 : index
    %0 = vector.load %arg3[%c0, %c0_0] : memref<8x8xbf16, #tpu.memory_space<vmem>>, vector<8x8xbf16>
    %c0_1 = arith.constant 0 : index
    %c0_2 = arith.constant 0 : index
    %1 = vector.load %arg1[%c0_1, %c0_2] : memref<8x1xbf16, #tpu.memory_space<vmem>>, vector<8x1xbf16>
    %cst = arith.constant dense<0.000000e+00> : vector<8x1xf32>
    %2 = tpu.matmul %0, %1, %cst {dimension_numbers = #tpu.dot_dimension_numbers<[1], [0], [0], [1], [0, 0, 1, 1], [], []>} : vector<8x8xbf16>, vector<8x1xbf16>, vector<8x1xf32> -> vector<8x1xf32>
    %c0_3 = arith.constant 0 : index
    %c0_4 = arith.constant 0 : index
    %3 = vector.load %arg2[%c0_3, %c0_4] : memref<1x1xf32, #tpu.memory_space<vmem>>, vector<1x1xf32>
    %4 = vector.broadcast %3 : vector<1x1xf32> to vector<8x1xf32>
    %5 = arith.addf %2, %4 : vector<8x1xf32>
    %c0_5 = arith.constant 0 : index
    %c0_6 = arith.constant 0 : index
    %6 = vector.load %arg4[%c0_5, %c0_6] : memref<8x1xf32, #tpu.memory_space<vmem>>, vector<8x1xf32>
    tpu.vector_store %arg4[%c0_5, %c0_6], %5 {strides = array<i32>} : memref<8x1xf32, #tpu.memory_space<vmem>>, vector<8x1xf32>,
    return
  }
  func.func @transform_0(%arg0: i32) -> (i32, i32) {
    %c0_i32 = arith.constant 0 : i32
    %c0_i32_0 = arith.constant 0 : i32
    %c0_i32_1 = arith.constant 0 : i32
    return %c0_i32, %c0_i32_0 : i32, i32
  }
  func.func @transform_1(%arg0: i32) -> (i32, i32) {
    %c0_i32 = arith.constant 0 : i32
    %c0_i32_0 = arith.constant 0 : i32
    %c0_i32_1 = arith.constant 0 : i32
    return %c0_i32, %c0_i32_0 : i32, i32
  }
  func.func @transform_2(%arg0: i32) -> (i32, i32) {
    %c0_i32 = arith.constant 0 : i32
    %c0_i32_0 = arith.constant 0 : i32
    return %arg0, %c0_i32 : i32, i32
  }
  func.func @transform_3(%arg0: i32) -> (i32, i32) {
    %c0_i32 = arith.constant 0 : i32
    %c0_i32_0 = arith.constant 0 : i32
    return %arg0, %c0_i32 : i32, i32
  }
}

</mosaic_0001>

<bundles_post_ra>
// kernel: mlp_forward.1
= control target key start
LH: loop header
LB: loop body
LE: loop exit
PB: predicated region body
PF: predicated region fallthrough
CT: control target
= control target key end

     0   :  { %vm27_vm0 = vcmask 1043456   ;;  %vm23_vm1 = vcmask 64512   ;;  %vm44_vm2 = vcmask 7168   ;;  %s84_s0 = inlined_call_operand.vmem [shape: bf16[8,1], index: 0, kind: input, shape index: {}]   ;;  %s85_s2 = inlined_call_operand.vmem [shape: bf16[8,8], index: 2, kind: input, shape index: {}]   ;;  %s86_s1 = inlined_call_operand.<no memory space> [shape: f32[1,1], index: 1, kind: input, shape index: {}]   ;;  %s87_s3 = inlined_call_operand.vmem [shape: f32[8,1], index: 3, kind: output, shape index: {}]  }
   0x1   :  { %v18_v0 = vld [vmem:[%s84_s0] sm:$0xf]  ;;  %v8_v1 = vstv %s86_s1 }
   0x2   :  { %v29_v2 = vsel %vm27_vm0, %v18_v0, 0  ;;  %9 = vst [vmem:[#allocation2] sm:$0x1] %v8_v1  ;;  %v17_v3 = vld [vmem:[%s85_s2] sm:$0xf] }
   0x3   :  { %38 = vmatpush.bf16.msra.mxu0 %v29_v2 }
   0x6   :  { %50 = vmatmul.msk.bf16.vlgmr.msra.gmra.mxu0 %vm23_vm1, %v17_v3 }
   0x9   :  { %v51_v4 = vld [vmem:[#allocation2] ss:$0 sm:$0xff] }
  0x83   :  { %v40_v5 = vpop.f32.mrf.mxu0 }
  0x84   :  { %v41_v6 = vadd.f32 %v51_v4, %v40_v5 }
  0x86   :  { %45 = vst.msk [vmem:[%s87_s3] sm:$0xff] %vm44_vm2, %v41_v6 }
  0x8b   :  { %v42_v7 = vpop.f32.mrf.mxu0 }

</bundles_post_ra>
